<compile_context>
chip_gen: v7x
topology: tpu7x:2x2x1
jax: 0.10.0
libtpu: 0.0.40
codegen_flags: <defaults>
</compile_context>

<pallas_src>
import jax
import jax.numpy as jnp
from jax.experimental import pallas as pl
from jax.experimental.pallas import tpu as pltpu


def _round_up(n, m):
    return -(-n // m) * m


def _fused_mlp_kernel(x_ref, w1t_ref, b1t_ref, wht_ref, bht_ref, mean_ref, std_ref):
    # x_ref: [tile_b, K]. Contract x's feature axis against W1^T's feature axis
    # so the result h^T = W1^T · x^T is [H, tile_b]: batch sits on the MXU
    # N / lane axis, the tiny weight is the streamed operand.
    h = jax.lax.dot_general(
        w1t_ref[...], x_ref[...],
        dimension_numbers=(((1,), (1,)), ((), ())),
        preferred_element_type=jnp.float32)                      # [H, tile_b]
    h = jnp.maximum(h + b1t_ref[...], 0.0)                       # bias bcast over lanes

    # Fused heads: y^T = [Wm | Ws]^T · h^T  -> [2*O, tile_b].
    y = jnp.dot(wht_ref[...], h, preferred_element_type=jnp.float32) + bht_ref[...]

    out_dim = mean_ref.shape[0]
    # Mean rows verbatim; numerically stable softplus only on the std rows.
    mean_ref[...] = y[:out_dim, :]
    z = y[out_dim:, :]
    std_ref[...] = jnp.maximum(z, 0.0) + jnp.log1p(jnp.exp(-jnp.abs(z))) + 1e-6


def simple_model_forward(x, params, input_dim, tile_b_max=2048):
    """x: any shape that flattens to [-1, input_dim]. Returns (mean, std),
    each of shape [batch, output_dim]. Eval-mode forward."""
    x2d = x.reshape(-1, input_dim).astype(jnp.float32)
    B = x2d.shape[0]
    H = params["w1"].shape[1]
    O = params["wm"].shape[1]

    # Transposed weights / biases for the batch-on-lane kernel (all tiny).
    w1t = params["w1"].T                                              # [H, K]
    b1t = params["b1"].reshape(H, 1)                                  # [H, 1]
    wht = jnp.concatenate([params["wm"], params["ws"]], axis=1).T     # [2O, H]
    bht = jnp.concatenate([params["bm"], params["bs"]], axis=1).reshape(2 * O, 1)

    # Batch tile = lane extent of the transposed compute. Multiple of 128 and,
    # when B allows, at least 2 grid steps so v7x can split the "parallel"
    # axis across its two TensorCores. No jnp.pad of x: ragged last blocks are
    # handled by Pallas boundary masking.
    if B <= 128:
        tile_b = B
    else:
        tile_b = min(tile_b_max, _round_up(pl.cdiv(B, 2), 128))
    grid_b = pl.cdiv(B, tile_b)

    mean_t, std_t = pl.pallas_call(
        _fused_mlp_kernel,
        out_shape=(jax.ShapeDtypeStruct((O, B), jnp.float32),
                   jax.ShapeDtypeStruct((O, B), jnp.float32)),
        grid=(grid_b,),
        in_specs=[
            pl.BlockSpec((tile_b, input_dim), lambda i: (i, 0)),   # x row-tile
            pl.BlockSpec((H, input_dim), lambda i: (0, 0)),        # W1^T
            pl.BlockSpec((H, 1), lambda i: (0, 0)),                # b1^T
            pl.BlockSpec((2 * O, H), lambda i: (0, 0)),            # [Wm|Ws]^T
            pl.BlockSpec((2 * O, 1), lambda i: (0, 0)),            # [bm|bs]^T
        ],
        out_specs=(
            pl.BlockSpec((O, tile_b), lambda i: (0, i)),           # mean^T
            pl.BlockSpec((O, tile_b), lambda i: (0, i)),           # std^T
        ),
        compiler_params=pltpu.CompilerParams(
            dimension_semantics=("parallel",)),
    )(x2d, w1t, b1t, wht, bht)

    # Tiny [O, B] -> [B, O] transposes of the results.
    return mean_t.T, std_t.T


def init_params(key, input_dim, num_units, output_dim):
    """PBP init: weight ~ N(0, 1/(fan_in+1)), bias = 0 (deterministic via key)."""
    k1, k2, k3 = jax.random.split(key, 3)

    def linear(k, fan_in, fan_out):
        w = jax.random.normal(k, (fan_in, fan_out), jnp.float32) * (1.0 / (fan_in + 1))
        b = jnp.zeros((1, fan_out), jnp.float32)
        return w, b

    w1, b1 = linear(k1, input_dim, num_units)
    wm, bm = linear(k2, num_units, output_dim)
    ws, bs = linear(k3, num_units, output_dim)
    return {"w1": w1, "b1": b1, "wm": wm, "bm": bm, "ws": ws, "bs": bs}


if __name__ == "__main__":
    input_dim, num_units, output_dim = 16, 32, 4

    key = jax.random.PRNGKey(0)
    kx, kp = jax.random.split(key)

    # Example input: (2, 4, 16) -> view(-1, 16) inside the wrapper (batch = 8).
    x = jax.random.normal(kx, (2, 4, input_dim), jnp.float32)
    params = init_params(kp, input_dim, num_units, output_dim)

    mean, std = simple_model_forward(x, params, input_dim)
    jax.block_until_ready((mean, std))

    # Reference check in plain JAX.
    x2d = x.reshape(-1, input_dim)
    h_ref = jnp.maximum(x2d @ params["w1"] + params["b1"], 0.0)
    mean_ref = h_ref @ params["wm"] + params["bm"]
    std_ref = jax.nn.softplus(h_ref @ params["ws"] + params["bs"]) + 1e-6

    assert mean.shape == mean_ref.shape and std.shape == std_ref.shape
    assert jnp.allclose(mean, mean_ref, atol=1e-5), "mean mismatch"
    assert jnp.allclose(std, std_ref, atol=1e-5), "std mismatch"
    assert bool(jnp.all(std > 0)), "std must be positive"

    # Also exercise the multi-step grid and the ragged (non-divisible) last
    # block: B=2000 with tile_b_max=512 -> 4 grid steps, last block partial.
    x_big = jax.random.normal(jax.random.PRNGKey(1), (2000, input_dim), jnp.float32)
    mean_b, std_b = simple_model_forward(x_big, params, input_dim, tile_b_max=512)
    jax.block_until_ready((mean_b, std_b))
    h_b = jnp.maximum(x_big @ params["w1"] + params["b1"], 0.0)
    assert jnp.allclose(mean_b, h_b @ params["wm"] + params["bm"], atol=1e-5)
    assert jnp.allclose(std_b, jax.nn.softplus(h_b @ params["ws"] + params["bs"]) + 1e-6,
                        atol=1e-5)

    print("KERNEL_OK")
</pallas_src>

<mosaic_0001>
module attributes {stable_mosaic.version = 11 : i64} {
  func.func @_fused_mlp_kernel(%arg0: i32, %arg1: memref<8x16xf32, #tpu.memory_space<vmem>>, %arg2: memref<32x16xf32, #tpu.memory_space<vmem>>, %arg3: memref<32x1xf32, #tpu.memory_space<vmem>>, %arg4: memref<8x32xf32, #tpu.memory_space<vmem>>, %arg5: memref<8x1xf32, #tpu.memory_space<vmem>>, %arg6: memref<4x8xf32, #tpu.memory_space<vmem>>, %arg7: memref<4x8xf32, #tpu.memory_space<vmem>>) attributes {dimension_semantics = [#tpu.dimension_semantics<parallel>], iteration_bounds = array<i64: 1>, scalar_prefetch = 0 : i64, scratch_operands = 0 : i64, tpu.core_type = #tpu.core_type<tc>, window_params = [{transform_indices = @transform_0, window_bounds = array<i64: 8, 16>}, {pipeline_mode = #tpu.pipeline_mode<synchronous>, transform_indices = @transform_1, window_bounds = array<i64: 32, 16>}, {pipeline_mode = #tpu.pipeline_mode<synchronous>, transform_indices = @transform_2, window_bounds = array<i64: 32, 1>}, {pipeline_mode = #tpu.pipeline_mode<synchronous>, transform_indices = @transform_3, window_bounds = array<i64: 8, 32>}, {pipeline_mode = #tpu.pipeline_mode<synchronous>, transform_indices = @transform_4, window_bounds = array<i64: 8, 1>}, {transform_indices = @transform_5, window_bounds = array<i64: 4, 8>}, {transform_indices = @transform_6, window_bounds = array<i64: 4, 8>}]} {
    %c0 = arith.constant 0 : index
    %c0_0 = arith.constant 0 : index
    %0 = vector.load %arg2[%c0, %c0_0] : memref<32x16xf32, #tpu.memory_space<vmem>>, vector<32x16xf32>
    %c0_1 = arith.constant 0 : index
    %c0_2 = arith.constant 0 : index
    %1 = vector.load %arg1[%c0_1, %c0_2] : memref<8x16xf32, #tpu.memory_space<vmem>>, vector<8x16xf32>
    %cst = arith.constant dense<0.000000e+00> : vector<32x8xf32>
    %2 = tpu.matmul %0, %1, %cst {dimension_numbers = #tpu.dot_dimension_numbers<[1], [1], [0], [0], [0, 0, 1, 0], [], []>} : vector<32x16xf32>, vector<8x16xf32>, vector<32x8xf32> -> vector<32x8xf32>
    %c0_3 = arith.constant 0 : index
    %c0_4 = arith.constant 0 : index
    %3 = vector.load %arg3[%c0_3, %c0_4] : memref<32x1xf32, #tpu.memory_space<vmem>>, vector<32x1xf32>
    %4 = vector.broadcast %3 : vector<32x1xf32> to vector<32x8xf32>
    %5 = arith.addf %2, %4 : vector<32x8xf32>
    %cst_5 = arith.constant 0.000000e+00 : f32
    %6 = vector.broadcast %cst_5 : f32 to vector<32x8xf32>
    %7 = arith.maximumf %5, %6 : vector<32x8xf32>
    %c0_6 = arith.constant 0 : index
    %c0_7 = arith.constant 0 : index
    %8 = vector.load %arg4[%c0_6, %c0_7] : memref<8x32xf32, #tpu.memory_space<vmem>>, vector<8x32xf32>
    %cst_8 = arith.constant dense<0.000000e+00> : vector<8x8xf32>
    %9 = tpu.matmul %8, %7, %cst_8 {dimension_numbers = #tpu.dot_dimension_numbers<[1], [0], [0], [1], [0, 0, 1, 1], [], []>} : vector<8x32xf32>, vector<32x8xf32>, vector<8x8xf32> -> vector<8x8xf32>
    %c0_9 = arith.constant 0 : index
    %c0_10 = arith.constant 0 : index
    %10 = vector.load %arg5[%c0_9, %c0_10] : memref<8x1xf32, #tpu.memory_space<vmem>>, vector<8x1xf32>
    %11 = vector.broadcast %10 : vector<8x1xf32> to vector<8x8xf32>
    %12 = arith.addf %9, %11 : vector<8x8xf32>
    %13 = vector.extract_strided_slice %12 {offsets = [0, 0], sizes = [4, 8], strides = [1, 1]} : vector<8x8xf32> to vector<4x8xf32>
    %c0_11 = arith.constant 0 : index
    %c0_12 = arith.constant 0 : index
    %14 = vector.load %arg6[%c0_11, %c0_12] : memref<4x8xf32, #tpu.memory_space<vmem>>, vector<4x8xf32>
    tpu.vector_store %arg6[%c0_11, %c0_12], %13 {strides = array<i32>} : memref<4x8xf32, #tpu.memory_space<vmem>>, vector<4x8xf32>,
    %15 = vector.extract_strided_slice %12 {offsets = [4, 0], sizes = [4, 8], strides = [1, 1]} : vector<8x8xf32> to vector<4x8xf32>
    %cst_13 = arith.constant 0.000000e+00 : f32
    %16 = vector.broadcast %cst_13 : f32 to vector<4x8xf32>
    %17 = arith.maximumf %15, %16 : vector<4x8xf32>
    %18 = math.absf %15 : vector<4x8xf32>
    %cst_14 = arith.constant 0.000000e+00 : f32
    %19 = vector.broadcast %cst_14 : f32 to vector<4x8xf32>
    %20 = arith.subf %19, %18 : vector<4x8xf32>
    %21 = math.exp %20 : vector<4x8xf32>
    %22 = math.log1p %21 : vector<4x8xf32>
    %23 = arith.addf %17, %22 : vector<4x8xf32>
    %cst_15 = arith.constant 9.99999997E-7 : f32
    %24 = vector.broadcast %cst_15 : f32 to vector<4x8xf32>
    %25 = arith.addf %23, %24 : vector<4x8xf32>
    %c0_16 = arith.constant 0 : index
    %c0_17 = arith.constant 0 : index
    %26 = vector.load %arg7[%c0_16, %c0_17] : memref<4x8xf32, #tpu.memory_space<vmem>>, vector<4x8xf32>
    tpu.vector_store %arg7[%c0_16, %c0_17], %25 {strides = array<i32>} : memref<4x8xf32, #tpu.memory_space<vmem>>, vector<4x8xf32>,
    return
  }
  func.func @transform_0(%arg0: i32) -> (i32, i32) {
    %c0_i32 = arith.constant 0 : i32
    %c0_i32_0 = arith.constant 0 : i32
    return %arg0, %c0_i32 : i32, i32
  }
  func.func @transform_1(%arg0: i32) -> (i32, i32) {
    %c0_i32 = arith.constant 0 : i32
    %c0_i32_0 = arith.constant 0 : i32
    %c0_i32_1 = arith.constant 0 : i32
    return %c0_i32, %c0_i32_0 : i32, i32
  }
  func.func @transform_2(%arg0: i32) -> (i32, i32) {
    %c0_i32 = arith.constant 0 : i32
    %c0_i32_0 = arith.constant 0 : i32
    %c0_i32_1 = arith.constant 0 : i32
    return %c0_i32, %c0_i32_0 : i32, i32
  }
  func.func @transform_3(%arg0: i32) -> (i32, i32) {
    %c0_i32 = arith.constant 0 : i32
    %c0_i32_0 = arith.constant 0 : i32
    %c0_i32_1 = arith.constant 0 : i32
    return %c0_i32, %c0_i32_0 : i32, i32
  }
  func.func @transform_4(%arg0: i32) -> (i32, i32) {
    %c0_i32 = arith.constant 0 : i32
    %c0_i32_0 = arith.constant 0 : i32
    %c0_i32_1 = arith.constant 0 : i32
    return %c0_i32, %c0_i32_0 : i32, i32
  }
  func.func @transform_5(%arg0: i32) -> (i32, i32) {
    %c0_i32 = arith.constant 0 : i32
    %c0_i32_0 = arith.constant 0 : i32
    return %c0_i32, %arg0 : i32, i32
  }
  func.func @transform_6(%arg0: i32) -> (i32, i32) {
    %c0_i32 = arith.constant 0 : i32
    %c0_i32_0 = arith.constant 0 : i32
    return %c0_i32, %arg0 : i32, i32
  }
}

</mosaic_0001>

<bundles_post_ra>
// kernel: tpu_custom_call.1
= control target key start
LH: loop header
LB: loop body
LE: loop exit
PB: predicated region body
PF: predicated region fallthrough
CT: control target
= control target key end

     0   :  { %12 = vsyncpa [#allocation3], 0  ;;  %vm53_vm0 = vcmask 130048   ;;  %v388_v4 = vmov 0   ;;  %s492_s0 = inlined_call_operand.vmem [shape: f32[8,16], index: 0, kind: input, shape index: {}]   ;;  %s493_s1 = inlined_call_operand.vmem [shape: f32[32,16], index: 1, kind: input, shape index: {}]   ;;  %s494_s2 = inlined_call_operand.vmem [shape: f32[32,1], index: 2, kind: input, shape index: {}]   ;;  %s495_s3 = inlined_call_operand.vmem [shape: f32[8,32], index: 3, kind: input, shape index: {}]   ;;  %s496_s4 = inlined_call_operand.vmem [shape: f32[8,1], index: 4, kind: input, shape index: {}]   ;;  %s497_s5 = inlined_call_operand.hbm [shape: f32[4,8], index: 5, kind: output, shape index: {0}]   ;;  %s498_s6 = inlined_call_operand.hbm [shape: f32[4,8], index: 6, kind: output, shape index: {1}]  }
   0x1   :  { %v28_v0 = vld [vmem:[%s492_s0] sm:$0xff]  ;;  %v25_v3 = vld [vmem:[%s493_s1 + $0x8] sm:$0xff]  ;;  %334 = vset.pattern.permute.xlu0 %v388_v4  ;;  %v31_v5 = vld [vmem:[%s494_s2 + $0x10] sm:$0xff]  ;;  %335 = vset.pattern.permute.xlu1 %v388_v4 }
   0x2   :  { %v24_v1 = vld [vmem:[%s493_s1] sm:$0xff]  ;;  %303 = vmatprep.subr.msk.mxu0 %vm53_vm0, %v28_v0  ;;  %v26_v6 = vld [vmem:[%s493_s1 + $0x10] sm:$0xff] }
   0x3   :  { %305 = vmatprep.mubr.msk.f32.mxu0 %vm53_vm0, %v24_v1  ;;  %v29_v2 = vld [vmem:[%s494_s2] sm:$0xff]  ;;  %304 = vmatpush3.xpose.msk.msra.mxu0 %vm53_vm0, %v28_v0 }
   0x4   :  { %35 = vperm.xlu0 %334, %v29_v2  }
   0x5   :  { %13 = vsyncpa [#allocation5], 0  ;;  %v30_v7 = vld [vmem:[%s494_s2 + $0x8] sm:$0xff]  ;;  %45 = vperm.xlu1 %335, %v31_v5   ;;  %v32_v8 = vld [vmem:[%s494_s2 + $0x18] sm:$0xff]  ;;  %v389_v11 = vmov 0.0|0.0   ;;  %vm390_vm1 = vmmov 0  }
   0x6   :  { %306 = vmatmul.mubr.msk.f32.vlgmr.msra.gmra.mrb[0].mxu0 %vm53_vm0, %v25_v3  ;;  %v27_v9 = vld [vmem:[%s493_s1 + $0x18] sm:$0xff]  ;;  %v159_v10 = vld [vmem:[%s496_s4] sm:$0xff]  ;;  %322 = vmatprep.subr.bf16.mxu1 %v389_v11  ;;  %v391_v12 = vmov 0.0   ;;  %vm165_vm2 = vcmask 261120   ;;  %s392_s4 = smov [#allocation2]   ;;  %vm239_vm3 = vcmask 60416  }
   0x7   :  { %308 = vmatprep.mubr.msk.f32.mxu0 %vm53_vm0, %v26_v6  ;;  %319 = vmatprep.mubr.msk.f32.mxu1 %vm390_vm1, %v391_v12  ;;  %v158_v31 = vld [vmem:[%s495_s3] sm:$0xff]  ;;  %s265_s16 = sshll.u32 %s392_s4, 4  ;;  %s266_s16 = int_to_ptr.vmem [resolvable:$true] %s265_s16 }
   0x8   :  { %40 = vperm.xlu0 %334, %v30_v7   ;;  %s340_s17 = scalar_lea.vmem %s266_s16, 64  ;;  %p345_p1 = scmp.lt.s32.totalorder %s266_s16, %s266_s16 }
   0x9   :  { %50 = vperm.xlu1 %335, %v32_v8   ;;  %p341_p0 = scmp.ne.s32.totalorder %s266_s16, %s340_s17  ;;  %p346_p2 = scmp.lt.s32.totalorder %s340_s17, %s340_s17 }
   0xa   :  { %309 = vmatmul.mubr.msk.f32.gmra.mrb[2].mxu0 %vm53_vm0, %v27_v9 }
   0xb   :  { %p347_p3 = por %p346_p2, %p345_p1 }
   0xc   :  { %162 = vperm.xlu0 %334, %v159_v10  }
   0xd   :  { %p348_p4 = pnand %p347_p3, %p341_p0 }
  0x83   :  { %v36_v13 = vpop.permute.xlu0 %35 }
  0x84   :  { %v46_v14 = vpop.permute.xlu1 %45 }
  0x87   :  { %v41_v15 = vpop.permute.xlu0 %40 }
  0x88   :  { %v51_v21 = vpop.permute.xlu1 %50 }
  0x8b   :  { %v163_v32 = vpop.permute.xlu0 %162 }
  0xd9   :  { %v307_v16 = vpop.f32.mrb[0].mxu0 }
  0xda   :  { %v141_v17 = vadd.f32 %v307_v16, %v41_v15  ;;  %v135_v18 = vpop.f32.mrb[1].mxu0 }
  0xdb   :  { %v136_v19 = vadd.f32 %v135_v18, %v36_v13 }
  0xdc   :  { %v155_v20 = vmax.f32 %v141_v17, 0.0 }
  0xdd   :  { %v154_v22 = vmax.f32 %v136_v19, 0.0  ;;  %v310_v23 = vpop.f32.mrb[2].mxu0 }
  0xde   :  { %v151_v24 = vadd.f32 %v310_v23, %v51_v21  ;;  %v145_v25 = vpop.f32.mrb[3].mxu0 }
  0xdf   :  { %v146_v26 = vadd.f32 %v145_v25, %v46_v14  ;;  %v323_v27 = vpack.c.bf16 %v155_v20, %v154_v22 }
  0xe0   :  { %v157_v28 = vmax.f32 %v151_v24, 0.0 }
  0xe1   :  { %v156_v29 = vmax.f32 %v146_v26, 0.0  ;;  %324 = vmatpush3.bf16.msra.mxu1 %v323_v27 }
  0xe2   :  { %325 = vmatprep.subr.bf16.mxu1 %v389_v11 }
  0xe3   :  { %v326_v30 = vpack.c.bf16 %v157_v28, %v156_v29 }
  0xe5   :  { %327 = vmatpush3.bf16.msra.mxu1 %v326_v30 }
  0xe8   :  { %320 = vmatmul.mubr.msk.f32.vlgmr.msra.gmra.mrb[0].mxu1 %vm165_vm2, %v158_v31 }
 0x1bb   :  { %v235_v33 = vpop.f32.mrb[0].mxu1 }
 0x1bc   :  { %v236_v34 = vadd.f32 %v235_v33, %v163_v32  ;;  %v321_v35 = vpop.f32.mrb[1].mxu1 }
 0x1be   :  { %v242_v36 = vand.u32 2147483647, %v236_v34  ;;  %240 = vst.msk [vmem:[#allocation2] sm:$0xf] %vm239_vm3, %v236_v34 }
 0x1bf   :  { %351 = shalt.err (!%p348_p4)
}
 0x1c0   :  { %s352_s19 = scalar_lea.hbm %s497_s5, 64 }
 0x1c1   :  { %p353_p5 = scmp.ne.s32.totalorder %s497_s5, %s352_s19  ;;  %p356_p6 = scmp.lt.u32.totalorder %s352_s19, %s497_s5 }
 0x1c3   :  { %p358_p7 = pnand %p356_p6, %p353_p5 }
 0x1c5   :  { %361 = shalt.err (!%p358_p7)
}
 0x1c6   :  { %268 = dma.vmem_to_hbm [thread:$0]  %s266_s16, 64, %s497_s5, [#allocation3]   ;;  %v243_v37 = vsub.f32 0.0, %v242_v36  ;;  %v241_v47 = vmax.f32 %v236_v34, 0.0  ;;  %vm257_vm5 = vcmask 64516  }
 0x1c7   :  { %s393_s26 = smov [#allocation4]  }
 0x1c8   :  { %v244_v38 = vmul.f32 1.442695, %v243_v37  ;;  %s275_s27 = sshll.u32 %s393_s26, 4  ;;  %s276_s27 = int_to_ptr.vmem [resolvable:$true] %s275_s27 }
 0x1c9   :  { %s362_s5 = scalar_lea.vmem %s276_s27, 64  ;;  %p367_p9 = scmp.lt.s32.totalorder %s276_s27, %s276_s27 }
 0x1ca   :  { %336 = vpow2.f32 %v244_v38  ;;  %p363_p8 = scmp.ne.s32.totalorder %s276_s27, %s362_s5  ;;  %p368_p10 = scmp.lt.s32.totalorder %s362_s5, %s362_s5 }
 0x1cc   :  { %p369_p11 = por %p368_p10, %p367_p9 }
 0x1ce   :  { %p370_p12 = pnand %p369_p11, %p363_p8 }
 0x1d4   :  { %v337_v39 = vpop.eup %336 }
 0x1d5   :  { %v246_v40 = vadd.f32 1.0, %v337_v39  ;;  %v249_v41 = vmul.f32 -0.5, %v337_v39  ;;  %v252_v43 = vand.u32 2147483647, %v337_v39 }
 0x1d7   :  { %338 = vlog2.f32 %v246_v40  ;;  %v250_v42 = vadd.f32 1.0, %v249_v41  ;;  %vm253_vm4 = vcmp.lt.f32.partialorder %v252_v43, 0.0004427343 }
 0x1d9   :  { %v251_v46 = vmul.f32 %v337_v39, %v250_v42 }
 0x1e1   :  { %v339_v44 = vpop.eup %338 }
 0x1e2   :  { %v248_v45 = vmul.f32 0.6931472, %v339_v44 }
 0x1e4   :  { %v254_v48 = vsel %vm253_vm4, %v251_v46, %v248_v45 }
 0x1e5   :  { %v255_v49 = vadd.f32 %v254_v48, %v241_v47 }
 0x1e7   :  { %v256_v50 = vadd.f32 1e-06, %v255_v49 }
 0x1e9   :  { %258 = vst.msk [vmem:[#allocation4 - $0x4] sm:$0xf0] %vm257_vm5, %v256_v50 }
 0x1ea   :  { %373 = shalt.err (!%p370_p12)
}
 0x1eb   :  { %s374_s29 = scalar_lea.hbm %s498_s6, 64 }
 0x1ec   :  { %p375_p13 = scmp.ne.s32.totalorder %s498_s6, %s374_s29  ;;  %p378_p0 = scmp.lt.u32.totalorder %s374_s29, %s498_s6 }
 0x1ee   :  { %p380_p1 = pnand %p378_p0, %p375_p13 }
 0x1f0   :  { %383 = shalt.err (!%p380_p1)
}
 0x1f1   :  { %278 = dma.vmem_to_hbm [thread:$0]  %s276_s27, 64, %s498_s6, [#allocation5]  }
 0x1f2   :  { %384 = dma.done.wait [#allocation3], 64  }
 0x1f3   :  { %385 = vsyncadd [#allocation3], 4294967232 }
 0x1f4   :  { %386 = dma.done.wait [#allocation5], 64  }
 0x1f5   :  { %387 = vsyncadd [#allocation5], 4294967232 }
 0x1f6   :  { %285 = vsyncpa [#allocation3], 1 }
 0x1f7   :  { %286 = vsyncpa [#allocation5], 1 }

</bundles_post_ra>
